<compile_context>
chip_gen: v6e
topology: v6e:2x2x1
jax: 0.10.0
libtpu: 0.0.40
codegen_flags: <defaults>
</compile_context>

<pallas_src>
import jax
import jax.numpy as jnp
from jax.experimental import pallas as pl
from jax.experimental.pallas import tpu as pltpu


LANE = 128
_BF16_SUBLANE = 16  # bf16 packs 16 rows per sublane tile


def _round_up(x, m):
    return (x + m - 1) // m * m


def _softmax_lastdim(s):
    # s is f32; keep all elementwise math f32 (v5e has no bf16 VPU/EUP path).
    m = jnp.max(s, axis=-1, keepdims=True)
    e = jnp.exp(s - m)
    return e * pl.reciprocal(jnp.sum(e, axis=-1, keepdims=True), approx=True)


def _rows_matmul(x, w):
    """(Bt, L, Din) bf16 @ (Din, Dout) bf16 -> (Bt, L, Dout) f32 accumulate.

    Collapses (Bt, L) into matmul rows only when that is a pure layout no-op
    for bf16 operands (L % 16 == 0); otherwise runs one 2-D matmul per batch
    element so Mosaic does not insert a relayout copy in front of the MXU.
    """
    Bt, L, Din = x.shape
    Dout = w.shape[1]
    if L % _BF16_SUBLANE == 0:
        y = jnp.dot(x.reshape(Bt * L, Din), w, preferred_element_type=jnp.float32)
        return y.reshape(Bt, L, Dout)
    ys = [jnp.dot(x[b], w, preferred_element_type=jnp.float32) for b in range(Bt)]
    return jnp.stack(ys, axis=0)


def _cross_attn_kernel(
    x1_ref, x2_ref,               # (Bt, L1, D1p) bf16, (Bt, L2, D2p) bf16
    wqkv1_ref, wqkv2_ref,         # (D1p, 3*Kp) bf16, (D2p, 3*Kp) bf16 (scale in Q cols)
    wo1_ref, bo1_ref,             # (Kp, D1p) bf16, (1, D1p) f32
    wo2_ref, bo2_ref,             # (Kp, D2p) bf16, (1, D2p) f32
    o1_ref, o2_ref,               # (Bt, L1, D1p), (Bt, L2, D2p)
):
    f32, bf16 = jnp.float32, jnp.bfloat16
    Kp = wqkv1_ref.shape[1] // 3

    x1 = x1_ref[...]
    x2 = x2_ref[...]

    # Fused QKV projections (one wide matmul per stream).
    qkv1 = _rows_matmul(x1, wqkv1_ref[...])   # (Bt, L1, 3Kp) f32
    qkv2 = _rows_matmul(x2, wqkv2_ref[...])   # (Bt, L2, 3Kp) f32

    # Slice at lane-aligned (multiple-of-128) boundaries.
    q1 = qkv1[..., 0 * Kp:1 * Kp].astype(bf16)
    k1 = qkv1[..., 1 * Kp:2 * Kp].astype(bf16)
    v1 = qkv1[..., 2 * Kp:3 * Kp].astype(bf16)
    q2 = qkv2[..., 0 * Kp:1 * Kp].astype(bf16)
    k2 = qkv2[..., 1 * Kp:2 * Kp].astype(bf16)
    v2 = qkv2[..., 2 * Kp:3 * Kp].astype(bf16)

    # attn1: x1 queries attend to x2 keys/values (1/sqrt(K) folded into q1).
    # Batched einsum contracts the last dims -> no XLU transpose of K.
    s1 = jnp.einsum("bqk,bsk->bqs", q1, k2, preferred_element_type=f32)   # (Bt,L1,L2)
    a1 = _softmax_lastdim(s1).astype(bf16)
    ctx1 = jnp.einsum("bqs,bsk->bqk", a1, v2, preferred_element_type=f32)  # (Bt,L1,Kp)

    # attn2: x2 queries attend to x1 keys/values.
    s2 = jnp.einsum("bqk,bsk->bqs", q2, k1, preferred_element_type=f32)   # (Bt,L2,L1)
    a2 = _softmax_lastdim(s2).astype(bf16)
    ctx2 = jnp.einsum("bqs,bsk->bqk", a2, v1, preferred_element_type=f32)  # (Bt,L2,Kp)

    # TODO(synk): optional `mask` argument (masked_fill with -1e9) not wired in;
    # the reference forward is exercised with mask=None.
    # TODO(synk): for production sequence lengths (L ~ 1-2K) the full (Bt,L1,L2)
    # score tensors should be flash-tiled over the key axis instead.

    # Output projections; bias added in f32; lane-dense store.
    out1 = _rows_matmul(ctx1.astype(bf16), wo1_ref[...]) + bo1_ref[...]
    out2 = _rows_matmul(ctx2.astype(bf16), wo2_ref[...]) + bo2_ref[...]

    o1_ref[...] = out1.astype(o1_ref.dtype)
    o2_ref[...] = out2.astype(o2_ref.dtype)


def _default_batch_tile(B):
    """Largest divisor of B that still gives >= 4 grid steps (>=2 cores on v7x)."""
    for bt in range(max(1, B // 4), 0, -1):
        if B % bt == 0:
            return bt
    return 1


def cross_attention_pallas(x1, x2, params, *, batch_tile=None):
    """x1: (B, L1, D1), x2: (B, L2, D2). Returns (out1 (B,L1,D1), out2 (B,L2,D2))."""
    B, L1, D1 = x1.shape
    B2, L2, D2 = x2.shape
    assert B == B2
    (wq1, wk2, wv2, wq2, wk1, wv1, wo1, bo1, wo2, bo2) = params
    K = wq1.shape[1]  # k_dim == D1 for num_heads=1

    # ----- wrapper-side packing / padding (tiny one-off XLA ops) -----
    Kp = _round_up(K, LANE)
    D1p = _round_up(D1, LANE)
    D2p = _round_up(D2, LANE)
    scale = 1.0 / (K ** 0.5)  # folded into the Q projection weights

    def pad2(w, rows, cols):
        return jnp.pad(w, ((0, rows - w.shape[0]), (0, cols - w.shape[1])))

    # Fused per-stream QKV weights, rows (contraction dim) padded to 128 too.
    wqkv1 = jnp.concatenate(
        [pad2(wq1 * scale, D1p, Kp), pad2(wk1, D1p, Kp), pad2(wv1, D1p, Kp)], axis=1)
    wqkv2 = jnp.concatenate(
        [pad2(wq2 * scale, D2p, Kp), pad2(wk2, D2p, Kp), pad2(wv2, D2p, Kp)], axis=1)

    # Output projections / biases padded lane-dense; biases stay f32.
    wo1p = pad2(wo1, Kp, D1p)
    wo2p = pad2(wo2, Kp, D2p)
    bo1p = jnp.pad(bo1, (0, D1p - D1)).reshape(1, D1p).astype(jnp.float32)
    bo2p = jnp.pad(bo2, (0, D2p - D2)).reshape(1, D2p).astype(jnp.float32)

    # bf16 MXU operands (f32 accumulation happens in-kernel); inputs padded on
    # the contraction dim so x loads are lane-dense and MXU passes are full.
    bf16 = jnp.bfloat16
    x1b = x1 if D1p == D1 else jnp.pad(x1, ((0, 0), (0, 0), (0, D1p - D1)))
    x2b = x2 if D2p == D2 else jnp.pad(x2, ((0, 0), (0, 0), (0, D2p - D2)))
    x1b = x1b.astype(bf16)
    x2b = x2b.astype(bf16)
    wqkv1 = wqkv1.astype(bf16)
    wqkv2 = wqkv2.astype(bf16)
    wo1p = wo1p.astype(bf16)
    wo2p = wo2p.astype(bf16)

    if batch_tile is None:
        batch_tile = _default_batch_tile(B)
    Bt = batch_tile
    assert B % Bt == 0, "batch_tile must divide batch"
    grid = (B // Bt,)

    # Grid-invariant weights: single-buffered (block index never changes).
    def weight_spec(w):
        return pl.BlockSpec(w.shape, lambda b: (0,) * w.ndim,
                            pipeline_mode=pl.Buffered(1))

    in_specs = [
        pl.BlockSpec((Bt, L1, D1p), lambda b: (b, 0, 0)),
        pl.BlockSpec((Bt, L2, D2p), lambda b: (b, 0, 0)),
        weight_spec(wqkv1), weight_spec(wqkv2),
        weight_spec(wo1p), weight_spec(bo1p),
        weight_spec(wo2p), weight_spec(bo2p),
    ]
    out_specs = [
        pl.BlockSpec((Bt, L1, D1p), lambda b: (b, 0, 0)),
        pl.BlockSpec((Bt, L2, D2p), lambda b: (b, 0, 0)),
    ]

    # Explicit VMEM budget from the actual per-step footprint (weights are
    # single-buffered; input/output blocks double-buffered; f32 intermediates).
    in_bytes = Bt * (L1 * D1p + L2 * D2p) * 2
    out_bytes = Bt * (L1 * D1p + L2 * D2p) * 4
    weight_bytes = (wqkv1.size + wqkv2.size + wo1p.size + wo2p.size) * 2 \
        + (bo1p.size + bo2p.size) * 4
    interm_bytes = (Bt * (L1 + L2) * 3 * Kp * (4 + 2)        # qkv f32 + bf16 q/k/v
                    + 2 * Bt * L1 * L2 * 4 * 2               # scores + exp (both dirs)
                    + Bt * (L1 + L2) * Kp * 4)               # contexts
    est = 2 * (in_bytes + out_bytes) + weight_bytes + interm_bytes
    vmem_limit = int(min(max(2 * est, 16 << 20), 64 << 20))

    flops = 2 * B * (L1 * D1p * 3 * Kp + L2 * D2p * 3 * Kp
                     + 4 * L1 * L2 * Kp
                     + L1 * Kp * D1p + L2 * Kp * D2p)
    cost = pl.CostEstimate(
        flops=flops,
        transcendentals=B * (2 * L1 * L2 + L1 + L2),
        bytes_accessed=(B * (L1 * D1p + L2 * D2p) * 2 + weight_bytes
                        + B * (L1 * D1p + L2 * D2p) * 4),
    )

    out1p, out2p = pl.pallas_call(
        _cross_attn_kernel,
        out_shape=(
            jax.ShapeDtypeStruct((B, L1, D1p), x1.dtype),
            jax.ShapeDtypeStruct((B, L2, D2p), x2.dtype),
        ),
        grid_spec=pltpu.PrefetchScalarGridSpec(
            num_scalar_prefetch=0,
            grid=grid,
            in_specs=in_specs,
            out_specs=out_specs,
        ),
        compiler_params=pltpu.CompilerParams(
            dimension_semantics=("parallel",),
            vmem_limit_bytes=vmem_limit,
        ),
        cost_estimate=cost,
    )(x1b, x2b, wqkv1, wqkv2, wo1p, bo1p, wo2p, bo2p)

    # Strip lane padding outside the kernel (no-op when D already 128-aligned).
    out1 = out1p if D1p == D1 else out1p[..., :D1]
    out2 = out2p if D2p == D2 else out2p[..., :D2]
    return out1, out2


def cross_attention_ref(x1, x2, params):
    """Pure-JAX f32 reference (mirrors the PyTorch forward, num_heads=1, mask=None)."""
    (wq1, wk2, wv2, wq2, wk1, wv1, wo1, bo1, wo2, bo2) = params
    K = wq1.shape[1]
    q1 = x1 @ wq1
    k2 = x2 @ wk2
    v2 = x2 @ wv2
    q2 = x2 @ wq2
    k1 = x1 @ wk1
    v1 = x1 @ wv1
    a1 = jax.nn.softmax(jnp.einsum("bqk,bsk->bqs", q1, k2) / (K ** 0.5), axis=-1)
    a2 = jax.nn.softmax(jnp.einsum("bqk,bsk->bqs", q2, k1) / (K ** 0.5), axis=-1)
    out1 = jnp.einsum("bqs,bsk->bqk", a1, v2) @ wo1 + bo1
    out2 = jnp.einsum("bqs,bsk->bqk", a2, v1) @ wo2 + bo2
    return out1, out2


def init_params(key, in_dim1, in_dim2, num_heads=1):
    k_dim = in_dim1
    v_dim = in_dim1
    keys = jax.random.split(key, 10)
    scale = 0.05
    # Stored as (in_features, out_features) == transposed nn.Linear weights.
    wq1 = scale * jax.random.normal(keys[0], (in_dim1, k_dim * num_heads), jnp.float32)
    wk2 = scale * jax.random.normal(keys[1], (in_dim2, k_dim * num_heads), jnp.float32)
    wv2 = scale * jax.random.normal(keys[2], (in_dim2, v_dim * num_heads), jnp.float32)
    wq2 = scale * jax.random.normal(keys[3], (in_dim2, k_dim * num_heads), jnp.float32)
    wk1 = scale * jax.random.normal(keys[4], (in_dim1, k_dim * num_heads), jnp.float32)
    wv1 = scale * jax.random.normal(keys[5], (in_dim1, v_dim * num_heads), jnp.float32)
    wo1 = scale * jax.random.normal(keys[6], (v_dim * num_heads, in_dim1), jnp.float32)
    bo1 = scale * jax.random.normal(keys[7], (in_dim1,), jnp.float32)
    wo2 = scale * jax.random.normal(keys[8], (v_dim * num_heads, in_dim2), jnp.float32)
    bo2 = scale * jax.random.normal(keys[9], (in_dim2,), jnp.float32)
    return (wq1, wk2, wv2, wq2, wk1, wv1, wo1, bo1, wo2, bo2)


if __name__ == "__main__":
    # Small shapes consistent with forward(x1: (B,L1,D1), x2: (B,L2,D2)).
    B, L1, L2 = 4, 16, 8
    in_dim1, in_dim2 = 32, 64

    key = jax.random.PRNGKey(0)
    kx1, kx2, kp = jax.random.split(key, 3)
    x1 = jax.random.normal(kx1, (B, L1, in_dim1), jnp.float32)
    x2 = jax.random.normal(kx2, (B, L2, in_dim2), jnp.float32)
    params = init_params(kp, in_dim1, in_dim2, num_heads=1)

    out1, out2 = cross_attention_pallas(x1, x2, params)  # default Bt -> grid of 4 steps
    jax.block_until_ready((out1, out2))

    ref1, ref2 = cross_attention_ref(x1, x2, params)
    # bf16 MXU operands + approx reciprocal -> loosened tolerance vs the f32 ref.
    assert jnp.allclose(out1, ref1, atol=2e-2, rtol=2e-2)
    assert jnp.allclose(out2, ref2, atol=2e-2, rtol=2e-2)

    print("KERNEL_OK")
</pallas_src>

<mosaic_0001>
module attributes {stable_mosaic.version = 11 : i64} {
  func.func @_cross_attn_kernel(%arg0: i32, %arg1: memref<1x16x128xbf16, #tpu.memory_space<vmem>>, %arg2: memref<1x8x128xbf16, #tpu.memory_space<vmem>>, %arg3: memref<128x384xbf16, #tpu.memory_space<vmem>>, %arg4: memref<128x384xbf16, #tpu.memory_space<vmem>>, %arg5: memref<128x128xbf16, #tpu.memory_space<vmem>>, %arg6: memref<1x128xf32, #tpu.memory_space<vmem>>, %arg7: memref<128x128xbf16, #tpu.memory_space<vmem>>, %arg8: memref<1x128xf32, #tpu.memory_space<vmem>>, %arg9: memref<1x16x128xf32, #tpu.memory_space<vmem>>, %arg10: memref<1x8x128xf32, #tpu.memory_space<vmem>>) attributes {dimension_semantics = [#tpu.dimension_semantics<parallel>], iteration_bounds = array<i64: 4>, scalar_prefetch = 0 : i64, scratch_operands = 0 : i64, tpu.core_type = #tpu.core_type<tc>, window_params = [{transform_indices = @transform_0, window_bounds = array<i64: 1, 16, 128>}, {transform_indices = @transform_1, window_bounds = array<i64: 1, 8, 128>}, {pipeline_mode = #tpu.pipeline_mode<synchronous>, transform_indices = @transform_2, window_bounds = array<i64: 128, 384>}, {pipeline_mode = #tpu.pipeline_mode<synchronous>, transform_indices = @transform_3, window_bounds = array<i64: 128, 384>}, {pipeline_mode = #tpu.pipeline_mode<synchronous>, transform_indices = @transform_4, window_bounds = array<i64: 128, 128>}, {pipeline_mode = #tpu.pipeline_mode<synchronous>, transform_indices = @transform_5, window_bounds = array<i64: 1, 128>}, {pipeline_mode = #tpu.pipeline_mode<synchronous>, transform_indices = @transform_6, window_bounds = array<i64: 128, 128>}, {pipeline_mode = #tpu.pipeline_mode<synchronous>, transform_indices = @transform_7, window_bounds = array<i64: 1, 128>}, {transform_indices = @transform_8, window_bounds = array<i64: 1, 16, 128>}, {transform_indices = @transform_9, window_bounds = array<i64: 1, 8, 128>}]} {
    %c0 = arith.constant 0 : index
    %c0_0 = arith.constant 0 : index
    %c0_1 = arith.constant 0 : index
    %0 = vector.load %arg1[%c0, %c0_0, %c0_1] : memref<1x16x128xbf16, #tpu.memory_space<vmem>>, vector<1x16x128xbf16>
    %c0_2 = arith.constant 0 : index
    %c0_3 = arith.constant 0 : index
    %c0_4 = arith.constant 0 : index
    %1 = vector.load %arg2[%c0_2, %c0_3, %c0_4] : memref<1x8x128xbf16, #tpu.memory_space<vmem>>, vector<1x8x128xbf16>
    %c0_5 = arith.constant 0 : index
    %c0_6 = arith.constant 0 : index
    %2 = vector.load %arg3[%c0_5, %c0_6] : memref<128x384xbf16, #tpu.memory_space<vmem>>, vector<128x384xbf16>
    %3 = vector.shape_cast %0 : vector<1x16x128xbf16> to vector<16x128xbf16>
    %cst = arith.constant dense<0.000000e+00> : vector<16x384xf32>
    %4 = tpu.matmul %3, %2, %cst {dimension_numbers = #tpu.dot_dimension_numbers<[1], [0], [0], [1], [0, 0, 1, 1], [], []>} : vector<16x128xbf16>, vector<128x384xbf16>, vector<16x384xf32> -> vector<16x384xf32>
    %5 = vector.shape_cast %4 : vector<16x384xf32> to vector<1x16x384xf32>
    %c0_7 = arith.constant 0 : index
    %c0_8 = arith.constant 0 : index
    %6 = vector.load %arg4[%c0_7, %c0_8] : memref<128x384xbf16, #tpu.memory_space<vmem>>, vector<128x384xbf16>
    %7 = vector.shape_cast %1 : vector<1x8x128xbf16> to vector<8x128xbf16>
    %cst_9 = arith.constant dense<0.000000e+00> : vector<8x384xf32>
    %8 = tpu.matmul %7, %6, %cst_9 {dimension_numbers = #tpu.dot_dimension_numbers<[1], [0], [0], [1], [0, 0, 1, 1], [], []>} : vector<8x128xbf16>, vector<128x384xbf16>, vector<8x384xf32> -> vector<8x384xf32>
    %9 = vector.shape_cast %8 : vector<8x384xf32> to vector<1x8x384xf32>
    %10 = vector.extract_strided_slice %5 {offsets = [0, 0, 0], sizes = [1, 16, 128], strides = [1, 1, 1]} : vector<1x16x384xf32> to vector<1x16x128xf32>
    %11 = arith.truncf %10 : vector<1x16x128xf32> to vector<1x16x128xbf16>
    %12 = vector.extract_strided_slice %5 {offsets = [0, 0, 128], sizes = [1, 16, 128], strides = [1, 1, 1]} : vector<1x16x384xf32> to vector<1x16x128xf32>
    %13 = arith.truncf %12 : vector<1x16x128xf32> to vector<1x16x128xbf16>
    %14 = vector.extract_strided_slice %5 {offsets = [0, 0, 256], sizes = [1, 16, 128], strides = [1, 1, 1]} : vector<1x16x384xf32> to vector<1x16x128xf32>
    %15 = arith.truncf %14 : vector<1x16x128xf32> to vector<1x16x128xbf16>
    %16 = vector.extract_strided_slice %9 {offsets = [0, 0, 0], sizes = [1, 8, 128], strides = [1, 1, 1]} : vector<1x8x384xf32> to vector<1x8x128xf32>
    %17 = arith.truncf %16 : vector<1x8x128xf32> to vector<1x8x128xbf16>
    %18 = vector.extract_strided_slice %9 {offsets = [0, 0, 128], sizes = [1, 8, 128], strides = [1, 1, 1]} : vector<1x8x384xf32> to vector<1x8x128xf32>
    %19 = arith.truncf %18 : vector<1x8x128xf32> to vector<1x8x128xbf16>
    %20 = vector.extract_strided_slice %9 {offsets = [0, 0, 256], sizes = [1, 8, 128], strides = [1, 1, 1]} : vector<1x8x384xf32> to vector<1x8x128xf32>
    %21 = arith.truncf %20 : vector<1x8x128xf32> to vector<1x8x128xbf16>
    "tpu.trace_start"() <{level = 10 : i32, message = "bqk,bsk->bqs"}> : () -> ()
    %cst_10 = arith.constant dense<0.000000e+00> : vector<1x16x8xf32>
    %22 = tpu.matmul %11, %19, %cst_10 {dimension_numbers = #tpu.dot_dimension_numbers<[2], [2], [1], [1], [0, 0, 0, 1, 1, 1], [0], [0]>} : vector<1x16x128xbf16>, vector<1x8x128xbf16>, vector<1x16x8xf32> -> vector<1x16x8xf32>
    "tpu.trace_stop"() : () -> ()
    %cst_11 = arith.constant dense<0xFF800000> : vector<1x16xf32>
    %23 = vector.multi_reduction <maximumf>, %22, %cst_11 [2] : vector<1x16x8xf32> to vector<1x16xf32>
    %24 = vector.shape_cast %23 : vector<1x16xf32> to vector<1x16x1xf32>
    %25 = vector.broadcast %24 : vector<1x16x1xf32> to vector<1x16x8xf32>
    %26 = arith.subf %22, %25 : vector<1x16x8xf32>
    %27 = math.exp %26 : vector<1x16x8xf32>
    %cst_12 = arith.constant dense<0.000000e+00> : vector<1x16xf32>
    %28 = vector.multi_reduction <add>, %27, %cst_12 [2] : vector<1x16x8xf32> to vector<1x16xf32>
    %29 = vector.shape_cast %28 : vector<1x16xf32> to vector<1x16x1xf32>
    %30 = tpu.reciprocal %29 {approx = true} : vector<1x16x1xf32> -> vector<1x16x1xf32>
    %31 = vector.broadcast %30 : vector<1x16x1xf32> to vector<1x16x8xf32>
    %32 = arith.mulf %27, %31 : vector<1x16x8xf32>
    %33 = arith.truncf %32 : vector<1x16x8xf32> to vector<1x16x8xbf16>
    "tpu.trace_start"() <{level = 10 : i32, message = "bqs,bsk->bqk"}> : () -> ()
    %cst_13 = arith.constant dense<0.000000e+00> : vector<1x16x128xf32>
    %34 = tpu.matmul %33, %21, %cst_13 {dimension_numbers = #tpu.dot_dimension_numbers<[2], [1], [1], [2], [0, 0, 0, 1, 1, 2], [0], [0]>} : vector<1x16x8xbf16>, vector<1x8x128xbf16>, vector<1x16x128xf32> -> vector<1x16x128xf32>
    "tpu.trace_stop"() : () -> ()
    "tpu.trace_start"() <{level = 10 : i32, message = "bqk,bsk->bqs"}> : () -> ()
    %cst_14 = arith.constant dense<0.000000e+00> : vector<1x8x16xf32>
    %35 = tpu.matmul %17, %13, %cst_14 {dimension_numbers = #tpu.dot_dimension_numbers<[2], [2], [1], [1], [0, 0, 0, 1, 1, 1], [0], [0]>} : vector<1x8x128xbf16>, vector<1x16x128xbf16>, vector<1x8x16xf32> -> vector<1x8x16xf32>
    "tpu.trace_stop"() : () -> ()
    %cst_15 = arith.constant dense<0xFF800000> : vector<1x8xf32>
    %36 = vector.multi_reduction <maximumf>, %35, %cst_15 [2] : vector<1x8x16xf32> to vector<1x8xf32>
    %37 = vector.shape_cast %36 : vector<1x8xf32> to vector<1x8x1xf32>
    %38 = vector.broadcast %37 : vector<1x8x1xf32> to vector<1x8x16xf32>
    %39 = arith.subf %35, %38 : vector<1x8x16xf32>
    %40 = math.exp %39 : vector<1x8x16xf32>
    %cst_16 = arith.constant dense<0.000000e+00> : vector<1x8xf32>
    %41 = vector.multi_reduction <add>, %40, %cst_16 [2] : vector<1x8x16xf32> to vector<1x8xf32>
    %42 = vector.shape_cast %41 : vector<1x8xf32> to vector<1x8x1xf32>
    %43 = tpu.reciprocal %42 {approx = true} : vector<1x8x1xf32> -> vector<1x8x1xf32>
    %44 = vector.broadcast %43 : vector<1x8x1xf32> to vector<1x8x16xf32>
    %45 = arith.mulf %40, %44 : vector<1x8x16xf32>
    %46 = arith.truncf %45 : vector<1x8x16xf32> to vector<1x8x16xbf16>
    "tpu.trace_start"() <{level = 10 : i32, message = "bqs,bsk->bqk"}> : () -> ()
    %cst_17 = arith.constant dense<0.000000e+00> : vector<1x8x128xf32>
    %47 = tpu.matmul %46, %15, %cst_17 {dimension_numbers = #tpu.dot_dimension_numbers<[2], [1], [1], [2], [0, 0, 0, 1, 1, 2], [0], [0]>} : vector<1x8x16xbf16>, vector<1x16x128xbf16>, vector<1x8x128xf32> -> vector<1x8x128xf32>
    "tpu.trace_stop"() : () -> ()
    %48 = arith.truncf %34 : vector<1x16x128xf32> to vector<1x16x128xbf16>
    %c0_18 = arith.constant 0 : index
    %c0_19 = arith.constant 0 : index
    %49 = vector.load %arg5[%c0_18, %c0_19] : memref<128x128xbf16, #tpu.memory_space<vmem>>, vector<128x128xbf16>
    %50 = vector.shape_cast %48 : vector<1x16x128xbf16> to vector<16x128xbf16>
    %cst_20 = arith.constant dense<0.000000e+00> : vector<16x128xf32>
    %51 = tpu.matmul %50, %49, %cst_20 {dimension_numbers = #tpu.dot_dimension_numbers<[1], [0], [0], [1], [0, 0, 1, 1], [], []>} : vector<16x128xbf16>, vector<128x128xbf16>, vector<16x128xf32> -> vector<16x128xf32>
    %52 = vector.shape_cast %51 : vector<16x128xf32> to vector<1x16x128xf32>
    %c0_21 = arith.constant 0 : index
    %c0_22 = arith.constant 0 : index
    %53 = vector.load %arg6[%c0_21, %c0_22] : memref<1x128xf32, #tpu.memory_space<vmem>>, vector<1x128xf32>
    %54 = vector.shape_cast %53 : vector<1x128xf32> to vector<1x1x128xf32>
    %55 = vector.broadcast %54 : vector<1x1x128xf32> to vector<1x16x128xf32>
    %56 = arith.addf %52, %55 : vector<1x16x128xf32>
    %57 = arith.truncf %47 : vector<1x8x128xf32> to vector<1x8x128xbf16>
    %c0_23 = arith.constant 0 : index
    %c0_24 = arith.constant 0 : index
    %58 = vector.load %arg7[%c0_23, %c0_24] : memref<128x128xbf16, #tpu.memory_space<vmem>>, vector<128x128xbf16>
    %59 = vector.shape_cast %57 : vector<1x8x128xbf16> to vector<8x128xbf16>
    %cst_25 = arith.constant dense<0.000000e+00> : vector<8x128xf32>
    %60 = tpu.matmul %59, %58, %cst_25 {dimension_numbers = #tpu.dot_dimension_numbers<[1], [0], [0], [1], [0, 0, 1, 1], [], []>} : vector<8x128xbf16>, vector<128x128xbf16>, vector<8x128xf32> -> vector<8x128xf32>
    %61 = vector.shape_cast %60 : vector<8x128xf32> to vector<1x8x128xf32>
    %c0_26 = arith.constant 0 : index
    %c0_27 = arith.constant 0 : index
    %62 = vector.load %arg8[%c0_26, %c0_27] : memref<1x128xf32, #tpu.memory_space<vmem>>, vector<1x128xf32>
    %63 = vector.shape_cast %62 : vector<1x128xf32> to vector<1x1x128xf32>
    %64 = vector.broadcast %63 : vector<1x1x128xf32> to vector<1x8x128xf32>
    %65 = arith.addf %61, %64 : vector<1x8x128xf32>
    %c0_28 = arith.constant 0 : index
    %c0_29 = arith.constant 0 : index
    %c0_30 = arith.constant 0 : index
    %66 = vector.load %arg9[%c0_28, %c0_29, %c0_30] : memref<1x16x128xf32, #tpu.memory_space<vmem>>, vector<1x16x128xf32>
    tpu.vector_store %arg9[%c0_28, %c0_29, %c0_30], %56 {strides = array<i32>} : memref<1x16x128xf32, #tpu.memory_space<vmem>>, vector<1x16x128xf32>,
    %c0_31 = arith.constant 0 : index
    %c0_32 = arith.constant 0 : index
    %c0_33 = arith.constant 0 : index
    %67 = vector.load %arg10[%c0_31, %c0_32, %c0_33] : memref<1x8x128xf32, #tpu.memory_space<vmem>>, vector<1x8x128xf32>
    tpu.vector_store %arg10[%c0_31, %c0_32, %c0_33], %65 {strides = array<i32>} : memref<1x8x128xf32, #tpu.memory_space<vmem>>, vector<1x8x128xf32>,
    return
  }
  func.func @transform_0(%arg0: i32) -> (i32, i32, i32) {
    %c0_i32 = arith.constant 0 : i32
    %c0_i32_0 = arith.constant 0 : i32
    %c0_i32_1 = arith.constant 0 : i32
    return %arg0, %c0_i32, %c0_i32_0 : i32, i32, i32
  }
  func.func @transform_1(%arg0: i32) -> (i32, i32, i32) {
    %c0_i32 = arith.constant 0 : i32
    %c0_i32_0 = arith.constant 0 : i32
    %c0_i32_1 = arith.constant 0 : i32
    return %arg0, %c0_i32, %c0_i32_0 : i32, i32, i32
  }
  func.func @transform_2(%arg0: i32) -> (i32, i32) {
    %c0_i32 = arith.constant 0 : i32
    %c0_i32_0 = arith.constant 0 : i32
    %c0_i32_1 = arith.constant 0 : i32
    return %c0_i32, %c0_i32_0 : i32, i32
  }
  func.func @transform_3(%arg0: i32) -> (i32, i32) {
    %c0_i32 = arith.constant 0 : i32
    %c0_i32_0 = arith.constant 0 : i32
    %c0_i32_1 = arith.constant 0 : i32
    return %c0_i32, %c0_i32_0 : i32, i32
  }
  func.func @transform_4(%arg0: i32) -> (i32, i32) {
    %c0_i32 = arith.constant 0 : i32
    %c0_i32_0 = arith.constant 0 : i32
    %c0_i32_1 = arith.constant 0 : i32
    return %c0_i32, %c0_i32_0 : i32, i32
  }
  func.func @transform_5(%arg0: i32) -> (i32, i32) {
    %c0_i32 = arith.constant 0 : i32
    %c0_i32_0 = arith.constant 0 : i32
    %c0_i32_1 = arith.constant 0 : i32
    return %c0_i32, %c0_i32_0 : i32, i32
  }
  func.func @transform_6(%arg0: i32) -> (i32, i32) {
    %c0_i32 = arith.constant 0 : i32
    %c0_i32_0 = arith.constant 0 : i32
    %c0_i32_1 = arith.constant 0 : i32
    return %c0_i32, %c0_i32_0 : i32, i32
  }
  func.func @transform_7(%arg0: i32) -> (i32, i32) {
    %c0_i32 = arith.constant 0 : i32
    %c0_i32_0 = arith.constant 0 : i32
    %c0_i32_1 = arith.constant 0 : i32
    return %c0_i32, %c0_i32_0 : i32, i32
  }
  func.func @transform_8(%arg0: i32) -> (i32, i32, i32) {
    %c0_i32 = arith.constant 0 : i32
    %c0_i32_0 = arith.constant 0 : i32
    %c0_i32_1 = arith.constant 0 : i32
    return %arg0, %c0_i32, %c0_i32_0 : i32, i32, i32
  }
  func.func @transform_9(%arg0: i32) -> (i32, i32, i32) {
    %c0_i32 = arith.constant 0 : i32
    %c0_i32_0 = arith.constant 0 : i32
    %c0_i32_1 = arith.constant 0 : i32
    return %arg0, %c0_i32, %c0_i32_0 : i32, i32, i32
  }
}

</mosaic_0001>

<bundles_post_ra>
// kernel: tpu_custom_call.1
= control target key start
LH: loop header
LB: loop body
LE: loop exit
PB: predicated region body
PF: predicated region fallthrough
CT: control target
= control target key end

     0   :  { %s2768_s0 = inlined_call_operand.hbm [shape: bf16[4,16,128], index: 0, kind: input, shape index: {}]   ;;  %s2769_s1 = inlined_call_operand.hbm [shape: bf16[4,8,128], index: 1, kind: input, shape index: {}]   ;;  %s2770_s2 = inlined_call_operand.hbm [shape: bf16[128,384], index: 2, kind: input, shape index: {}]   ;;  %s2771_s3 = inlined_call_operand.hbm [shape: bf16[128,384], index: 3, kind: input, shape index: {}]   ;;  %s2772_s4 = inlined_call_operand.hbm [shape: bf16[128,128], index: 4, kind: input, shape index: {}]   ;;  %s2773_s5 = inlined_call_operand.vmem [shape: f32[1,128], index: 5, kind: input, shape index: {}]   ;;  %s2774_s6 = inlined_call_operand.hbm [shape: bf16[128,128], index: 6, kind: input, shape index: {}]   ;;  %s2775_s7 = inlined_call_operand.vmem [shape: f32[1,128], index: 7, kind: input, shape index: {}]   ;;  %s2776_s8 = inlined_call_operand.hbm [shape: f32[4,16,128], index: 8, kind: output, shape index: {0}]   ;;  %s2777_s9 = inlined_call_operand.hbm [shape: f32[4,8,128], index: 9, kind: output, shape index: {1}]  }
   0x1   :  { %2785 = sst [smem:[#allocation25_spill]] %s2768_s0 }
   0x2   :  { %2786 = sst [smem:[#allocation26_spill]] %s2770_s2 }
   0x3   :  { %2787 = sst [smem:[#allocation27_spill]] %s2771_s3 }
   0x4   :  { %2788 = sst [smem:[#allocation28_spill]] %s2772_s4 }
   0x5   :  { %2789 = sst [smem:[#allocation29_spill]] %s2774_s6 }
   0x6   :  { %15 = vsyncpa [#allocation3], 0 }
   0x7   :  { %17 = vsyncpa [#allocation3 + $0x1], 0 }
   0x8   :  { %18 = vsyncpa [#allocation6], 0 }
   0x9   :  { %20 = vsyncpa [#allocation6 + $0x1], 0 }
   0xa   :  { %21 = vsyncpa [#allocation9], 0 }
   0xb   :  { %22 = vsyncpa [#allocation12], 0 }
   0xc   :  { %23 = vsyncpa [#allocation4], 0 }
   0xd   :  { %25 = vsyncpa [#allocation4 + $0x1], 0 }
   0xe   :  { %26 = vsyncpa [#allocation15], 0 }
   0xf   :  { %28 = vsyncpa [#allocation15 + $0x1], 0  ;;  %s2381_s30 = smov 0   ;;  %s2383_s10 = smov 0  }
  0x10   :  { %s2385_s11 = smov 0   ;;  %s2387_s12 = smov 0  }
  0x11 LB: > { %2790 = sst [smem:[#allocation23_spill]] %s2308_s11  ;;  %s2402_s13 = sadd.s32 4294967295, %s2312_s12   ;;  %s2312_s12 = sphi %s2387_s12, %s2822_s12   ;;  %s2308_s11 = sphi %s2385_s11, %s2819_s11   ;;  %s2304_s10 = sphi %s2383_s10, %s2821_s10   ;;  %s2300_s30 = sphi %s2381_s30, %s2820_s30  }
  0x12   : > { %s1596_s14 = sadd.s32 4294967294, %s2312_s12   ;;  %p54_p0 = scmp.ne.s32.totalorder %s2304_s10, %s2300_s30 }
  0x13   : > { %p2778_p1 = scmp.eq.s32.totalorder %s2402_s13, 0  ;;  %p236_p3 = scmp.eq.s32.totalorder %s1596_s14, 3 }
  0x14   : > { %p1597_p5 = scmp.ge.s32.totalorder %s2312_s12, 1  ;;  %p269_p7 = scmp.lt.s32.totalorder %s2312_s12, 5 }
  0x15   : > { %p2411_p4 = por %p2778_p1, %p54_p0  ;;  %p2416_p6 = por %p236_p3, %p54_p0 }
  0x16   : > { %p2421_p8 = pnand %p1597_p5, %p269_p7  ;;  %s2314_s18 = smov [#allocation7]  }
  0x17   : > { %s2791_s15 = scalar_select %p2411_p4, 1, 0 }
  0x18   : > { %s2792_s16 = scalar_select %p2416_p6, 1, 0 }
  0x19   : > { %s2793_s17 = scalar_select %p2421_p8, 1, 0 }
  0x1a   : > { %s281_s19 = sshll.u32 %s2314_s18, 4  ;;  %p1867_p9 = pneg %p2421_p8  ;;  %s282_s19 = int_to_ptr.vmem [resolvable:$true] %s281_s19 }
  0x1b   : > { %s2315_s21 = smov [#allocation8]   ;;  %s2316_s23 = smov [#allocation10]  }
  0x1c   : > { %p2429_p10 = pnand %p1867_p9, %p2778_p1  ;;  %s294_s22 = sshll.u32 %s2315_s21, 4  ;;  %s295_s22 = int_to_ptr.vmem [resolvable:$true] %s294_s22 }
  0x1d   : > { %s307_s24 = sshll.u32 %s2316_s23, 4  ;;  %s2053_s25 = scalar_lea.vmem %s282_s19, 3072  ;;  %s308_s24 = int_to_ptr.vmem [resolvable:$true] %s307_s24 }
  0x1e   : > { %p2044_p11 = pneg %p2429_p10  ;;  %p2054_p12 = scmp.ne.s32.totalorder %s282_s19, %s2053_s25 }
  0x1f   : > { %p2061_p3 = scmp.lt.s32.totalorder %s282_s19, %s282_s19  ;;  %p2062_p5 = scmp.lt.s32.totalorder %s2053_s25, %s2053_s25 }
  0x20   : > { %p2056_p13 = pnand %p2054_p12, %p2044_p11 }
  0x21   : > { %p2063_p7 = por %p2062_p5, %p2061_p3 }
  0x22   : > { %p2057_p0 = pneg %p2056_p13 }
  0x24   : > { %p2064_p9 = pnand %p2063_p7, %p2057_p0 }
  0x26   : > { %2067 = shalt.err (!%p2064_p9)
}
  0x27   : > { %s2317_s26 = smov 192   ;;  %s2318_s27 = smov 12  }
  0x28   : > { %s2795_s2 = sld [smem:[#allocation26_spill]]  ;;  %s2079_s14 = scalar_lea.vmem %s295_s22, 3072 }
  0x29   : > { %p2080_p1 = scmp.ne.s32.totalorder %s295_s22, %s2079_s14  ;;  %p2087_p2 = scmp.lt.s32.totalorder %s295_s22, %s295_s22 }
  0x2a   : > { %p2088_p6 = scmp.lt.s32.totalorder %s2079_s14, %s2079_s14 }
  0x2b   : > { %p2082_p12 = pnand %p2080_p1, %p2044_p11 }
  0x2c   : > { %p2089_p3 = por %p2088_p6, %p2087_p2 }
  0x2d   : > { %p2083_p13 = pneg %p2082_p12 }
  0x2e   : > { %1870 = dma.hbm_to_vmem [thread:$0]  (!%p2429_p10), %s2795_s2, 3072, %s282_s19, [#allocation6], %s2317_s26, %s2317_s26, %s2318_s27  }
  0x2f   : > { %p2090_p0 = pnand %p2089_p3, %p2083_p13 }
  0x31   : > { %2093 = shalt.err (!%p2090_p0)
}
  0x32   : > { %s2796_s3 = sld [smem:[#allocation27_spill]]  ;;  %s2105_s19 = scalar_lea.vmem %s308_s24, 1024 }
  0x33   : > { %p2106_p5 = scmp.ne.s32.totalorder %s308_s24, %s2105_s19  ;;  %p2113_p9 = scmp.lt.s32.totalorder %s308_s24, %s308_s24 }
  0x34   : > { %p2114_p12 = scmp.lt.s32.totalorder %s2105_s19, %s2105_s19 }
  0x35   : > { %p2108_p7 = pnand %p2106_p5, %p2044_p11 }
  0x36   : > { %p2115_p4 = por %p2114_p12, %p2113_p9 }
  0x37   : > { %p2109_p1 = pneg %p2108_p7 }
  0x38   : > { %1873 = dma.hbm_to_vmem [thread:$0]  (!%p2429_p10), %s2796_s3, 3072, %s295_s22, [#allocation9], %s2317_s26, %s2317_s26, %s2318_s27  }
  0x39   : > { %p2116_p2 = pnand %p2115_p4, %p2109_p1 }
  0x3b   : > { %2119 = shalt.err (!%p2116_p2)
}
  0x3c   : > { %s2780_s23 = smov 64   ;;  %s2781_s25 = smov 4  }
  0x3d   : > { %s2797_s4 = sld [smem:[#allocation28_spill]]  ;;  %s2321_s27 = smov [#allocation11]  }
  0x3e   : > { %s323_s28 = sshll.u32 %s2321_s27, 4  ;;  %s324_s28 = int_to_ptr.vmem [resolvable:$true] %s323_s28 }
  0x3f   : > { %s2131_s29 = scalar_lea.vmem %s324_s28, 1024  ;;  %p2139_p3 = scmp.lt.s32.totalorder %s324_s28, %s324_s28 }
  0x40   : > { %p2132_p6 = scmp.ne.s32.totalorder %s324_s28, %s2131_s29  ;;  %p2140_p0 = scmp.lt.s32.totalorder %s2131_s29, %s2131_s29 }
  0x42   : > { %p2134_p4 = pnand %p2132_p6, %p2044_p11  ;;  %p2141_p5 = por %p2140_p0, %p2139_p3 }
  0x43   : > { %1876 = dma.hbm_to_vmem [thread:$0]  (!%p2429_p10), %s2797_s4, 1024, %s308_s24, [#allocation9], %s2780_s23, %s2780_s23, %s2781_s25  }
  0x44   : > { %p2135_p13 = pneg %p2134_p4 }
  0x46   : > { %p2142_p7 = pnand %p2141_p5, %p2135_p13 }
  0x48   : > { %2145 = shalt.err (!%p2142_p7)
}
  0x49   : > { %s2798_s6 = sld [smem:[#allocation29_spill]]  ;;  %s2474_s18 = sadd.s32 1, %s2312_s12  }
  0x4a   : > { %s41_s20 = sadd.s32 1, %s2308_s11  ;;  %s38_s21 = ssub.s32 %s2312_s12, %s2474_s18 }
  0x4b   : > { %p48_p11 = scmp.ne.s32.totalorder %s2308_s11, %s2304_s10  ;;  %p39_p1 = scmp.eq.s32.totalorder %s38_s21, 0 }
  0x4c   : > { %p49_p9 = scmp.eq.s32.totalorder %s2312_s12, 0  ;;  %p2799_p12 = scmp.eq.s32.totalorder %s2402_s13, 3 }
  0x4d   : > { %p1898_p6 = scmp.lt.s32.totalorder %s2312_s12, 4  ;;  %s2493_s26 = sand.u32 1, %s2308_s11  }
  0x4e   : > { %p2484_p2 = por %p2799_p12, %p48_p11  ;;  %p50_p4 = por %p49_p9, %p48_p11 }
  0x4f   : > { %1879 = dma.hbm_to_vmem [thread:$0]  (!%p2429_p10), %s2798_s6, 1024, %s324_s28, [#allocation12], %s2780_s23, %s2780_s23, %s2781_s25  }
  0x50   : > { %s2800_s19 = scalar_select %p2484_p2, 1, 0 }
  0x51   : > { %s2490_s22 = scalar_select %p39_p1, %s2308_s11, %s41_s20  }
  0x52   : > { %s1603_s27 = sshll.u32 %s2493_s26, 3  ;;  %s1693_s28 = sshll.u32 %s2312_s12, 7 }
  0x53   : > { %2801 = sst [smem:[#allocation24_spill]] %s2490_s22  ;;  %s344_s21 = scalar_lea.vmem [#allocation2], %s1603_s27 }
  0x54   : > { %s2802_s0 = sld [smem:[#allocation25_spill]]  ;;  %s351_s23 = sshll.u32 %s344_s21, 4  ;;  %s2502_s23 = int_to_ptr.vmem [resolvable:$true] %s351_s23 }
  0x55   : > { %p2504_p10 = pnand %p1898_p6, %p50_p4  ;;  %s341_s3 = scalar_lea.sflag [#allocation3], %s2493_s26 }
  0x57   : > { %p2148_p3 = pneg %p2504_p10 }
  0x5a   : > { %s2500_s14 = scalar_lea.hbm %s2802_s0, %s1693_s28  ;;  %s2151_s29 = scalar_lea.hbm %s2802_s0, 512 }
  0x5b   : > { %s2146_s4 = scalar_lea.hbm %s2500_s14, 128  ;;  %p2152_p7 = scmp.lt.s32.totalorder %s2500_s14, %s2802_s0 }
  0x5c   : > { %p2147_p13 = scmp.ne.s32.totalorder %s2500_s14, %s2146_s4  ;;  %p2153_p11 = scmp.lt.s32.totalorder %s2151_s29, %s2146_s4 }
  0x5e   : > { %p2149_p0 = pnand %p2148_p3, %p2147_p13  ;;  %p2154_p1 = por %p2153_p11, %p2152_p7 }
  0x60   : > { %p2150_p5 = pneg %p2149_p0 }
  0x62   : > { %p2155_p9 = pnand %p2154_p1, %p2150_p5 }
  0x64   : > { %2158 = shalt.err (!%p2155_p9)
}
  0x65   : > { %s2159_s25 = scalar_lea.vmem %s2502_s23, 128  ;;  %s2322_s27 = smov [#allocation2]  }
  0x66   : > { %p2160_p12 = scmp.ne.s32.totalorder %s2502_s23, %s2159_s25  ;;  %s2164_s28 = sshll.u32 %s2322_s27, 4  ;;  %s2165_s28 = int_to_ptr.vmem [resolvable:$false] %s2164_s28 }
  0x67   : > { %s2166_s2 = scalar_lea.vmem %s2165_s28, 256  ;;  %p2167_p13 = scmp.lt.s32.totalorder %s2502_s23, %s2165_s28 }
  0x68   : > { %p2162_p6 = pnand %p2160_p12, %p2148_p3  ;;  %p2168_p0 = scmp.lt.s32.totalorder %s2166_s2, %s2159_s25 }
  0x6a   : > { %p2163_p4 = pneg %p2162_p6  ;;  %p2169_p2 = por %p2168_p0, %p2167_p13 }
  0x6c   : > { %p2170_p7 = pnand %p2169_p2, %p2163_p4 }
  0x6e   : > { %2173 = shalt.err (!%p2170_p7)
}
  0x6f   : > { %s2804_s4 = smov 4   ;;  %s2805_s29 = smov 64  }
  0x70   : > { %1883 = dma.hbm_to_vmem [thread:$0]  (!%p2504_p10), %s2500_s14, 128, %s2502_s23, %s341_s3, %s2805_s29, %s2805_s29, %s2804_s4  }
  0x71   : > { %s1607_s24 = sshll.u32 %s2312_s12, 6  ;;  %s2806_s27 = sshll.u32 %s2493_s26, 2 }
  0x72   : > { %s2544_s25 = scalar_lea.hbm %s2769_s1, %s1607_s24  ;;  %s365_s28 = scalar_lea.vmem [#allocation5], %s2806_s27 }
  0x73   : > { %s372_s0 = sshll.u32 %s365_s28, 4  ;;  %s2807_s6 = sand.u32 1, %s2312_s12   ;;  %s373_s0 = int_to_ptr.vmem [resolvable:$true] %s372_s0 }
  0x74   : > { %s362_s22 = scalar_lea.sflag [#allocation6], %s2807_s6  ;;  %s2174_s11 = scalar_lea.hbm %s2544_s25, 64 }
  0x75   : > { %p2175_p2 = scmp.ne.s32.totalorder %s2544_s25, %s2174_s11  ;;  %s2179_s14 = scalar_lea.hbm %s2769_s1, 256 }
  0x76   : > { %p2180_p1 = scmp.lt.s32.totalorder %s2544_s25, %s2769_s1  ;;  %p2181_p9 = scmp.lt.s32.totalorder %s2179_s14, %s2174_s11 }
  0x77   : > { %p2177_p5 = pnand %p2175_p2, %p2148_p3 }
  0x78   : > { %p2182_p12 = por %p2181_p9, %p2180_p1 }
  0x79   : > { %p2178_p11 = pneg %p2177_p5 }
  0x7b   : > { %p2183_p6 = pnand %p2182_p12, %p2178_p11 }
  0x7d   : > { %2186 = shalt.err (!%p2183_p6)
}
  0x7e   : > { %s2187_s29 = scalar_lea.vmem %s373_s0, 64  ;;  %s2323_s6 = smov [#allocation5]  }
  0x7f   : > { %p2188_p4 = scmp.ne.s32.totalorder %s373_s0, %s2187_s29  ;;  %s2192_s24 = sshll.u32 %s2323_s6, 4  ;;  %s2193_s24 = int_to_ptr.vmem [resolvable:$false] %s2192_s24 }
  0x80   : > { %s2194_s21 = scalar_lea.vmem %s2193_s24, 128  ;;  %p2195_p7 = scmp.lt.s32.totalorder %s373_s0, %s2193_s24 }
  0x81   : > { %p2190_p13 = pnand %p2188_p4, %p2148_p3  ;;  %p2196_p2 = scmp.lt.s32.totalorder %s2194_s21, %s2187_s29 }
  0x83   : > { %p2191_p0 = pneg %p2190_p13  ;;  %p2197_p5 = por %p2196_p2, %p2195_p7 }
  0x85   : > { %p2198_p8 = pnand %p2197_p5, %p2191_p0 }
  0x87   : > { %2201 = shalt.err (!%p2198_p8)
}
  0x88   : > { %1886 = dma.hbm_to_vmem [thread:$0]  (!%p2504_p10), %s2544_s25, 64, %s373_s0, %s362_s22  }
  0x89   : > { %p2808_p11 = scmp.ne.s32.totalorder %s2793_s17, 0 }
  0x8a   : > { %s2571_s11 = sand.u32 (!%p2808_p11), 1, %s2304_s10   ;;  %p2809_p8 = scmp.ne.s32.totalorder (!%p2808_p11), %s2791_s15, 0 }
  0x8b   : > { %381 = sbr.rel (%p2808_p11) target bundleno = 1373 (0x55d), region = 52  ;;  %s1609_s2 = sshll.u32 (!%p2808_p11), %s2571_s11, 3 }
  0x8c   : > { %s384_s27 = scalar_lea.sflag (!%p2808_p11), [#allocation3], %s2571_s11  ;;  %s2577_s28 = scalar_lea.vmem (!%p2808_p11), [#allocation2], %s1609_s2 }
  0x90   : > { %2271 = dma.done.wait (%p2809_p8), %s384_s27, 128  }
  0x91   : > { %2273 = vsyncadd (%p2809_p8), %s384_s27, 4294967168  ;;  %s392_s0 = sand.u32 1, %s2402_s13   ;;  %s1610_s17 = sshll.u32 %s2571_s11, 2 }
  0x92   : > { %s393_s22 = scalar_lea.sflag [#allocation6], %s392_s0  ;;  %s2585_s20 = scalar_lea.vmem [#allocation5], %s1610_s17 }
  0x93   : > { %2275 = dma.done.wait (%p2809_p8), %s393_s22, 64  }
  0x94   : > { %2277 = vsyncadd (%p2809_p8), %s393_s22, 4294967232  ;;  %p2810_p10 = scmp.eq.s32.totalorder %s2402_s13, 0 }
  0x96   : > { %2279 = dma.done.wait (%p2810_p10), [#allocation6], 3072   ;;  %p2811_p3 = pmov %p2810_p10 }
  0x98   : > { %2281 = vsyncadd (%p2811_p3), [#allocation6], 4294964224  ;;  %p2812_p1 = pmov %p2811_p3 }
  0x9a   : > { %2283 = dma.done.wait (%p2812_p1), [#allocation9], 4096   ;;  %p2813_p9 = pmov %p2812_p1 }
  0x9b   : > { %p2814_p12 = pmov %p2812_p1 }
  0x9c   : > { %2285 = vsyncadd (%p2813_p9), [#allocation9], 4294963200 }
  0x9d   : > { %2287 = dma.done.wait (%p2814_p12), [#allocation12], 1024   ;;  %p2815_p6 = pmov %p2812_p1 }
  0x9e   : > { %v2324_v0 = vmov 0   ;;  %v1949_v1 = vld [vmem:[#allocation7 + $0xac] ss:$12 sps:$4 sm:$0xff]   ;;  %v1951_v2 = vld [vmem:[#allocation7 + $0xa8] ss:$12 sps:$4 sm:$0xff]   ;;  %v2325_v35 = vmov 0.0  }
  0x9f   : > { %2289 = vsyncadd (%p2815_p6), [#allocation12], 4294966272  ;;  %659 = vmatprep.mubr.bf16.mxu0 %v2324_v0  ;;  %627 = vmatprep.subr.bf16.mxu0 %v1949_v1  ;;  %v1952_v3 = vld [vmem:[#allocation7 + $0x94] ss:$12 sps:$4 sm:$0xff]   ;;  %v1954_v4 = vld [vmem:[#allocation7 + $0x90] ss:$12 sps:$4 sm:$0xff]  }
  0xa0   : > { %628 = vmatpush1.bf16.msra.mxu0 %v1951_v2  ;;  %v1955_v5 = vld [vmem:[#allocation7 + $0x7c] ss:$12 sps:$4 sm:$0xff]   ;;  %v1957_v6 = vld [vmem:[#allocation7 + $0x78] ss:$12 sps:$4 sm:$0xff]   ;;  %v1960_v8 = vld [vmem:[#allocation7 + $0x60] ss:$12 sps:$4 sm:$0xff]   ;;  %1739 = vmatprep.subr.bf16.mxu1 %v2325_v35 }
  0xa1   : > { %629 = vmatprep.subr.bf16.mxu0 %v1952_v3  ;;  %v1958_v7 = vld [vmem:[#allocation7 + $0x64] ss:$12 sps:$4 sm:$0xff]   ;;  %v1961_v9 = vld [vmem:[#allocation7 + $0x4c] ss:$12 sps:$4 sm:$0xff]   ;;  %v1963_v10 = vld [vmem:[#allocation7 + $0x48] ss:$12 sps:$4 sm:$0xff]  }
  0xa2   : > { %v1964_v11 = vld [vmem:[#allocation7 + $0x34] ss:$12 sps:$4 sm:$0xff]   ;;  %v1966_v12 = vld [vmem:[#allocation7 + $0x30] ss:$12 sps:$4 sm:$0xff]   ;;  %v1969_v14 = vld [vmem:[#allocation7 + $0x18] ss:$12 sps:$4 sm:$0xff]  }
  0xa3   : > { %v1967_v13 = vld [vmem:[#allocation7 + $0x1c] ss:$12 sps:$4 sm:$0xff]   ;;  %v1970_v15 = vld [vmem:[#allocation7 + $0x4] ss:$12 sps:$4 sm:$0xff]   ;;  %v1972_v16 = vld [vmem:[#allocation7] ss:$12 sps:$4 sm:$0xff]  }
  0xa4   : > { %630 = vmatpush1.bf16.msra.mxu0 %v1954_v4  ;;  %v1976_v17 = vld [vmem:[#allocation8 + $0xac] ss:$12 sps:$4 sm:$0xff]   ;;  %v1974_v19 = vld [vmem:[#allocation8 + $0xa8] ss:$12 sps:$4 sm:$0xff]   ;;  %v1977_v21 = vld [vmem:[#allocation8 + $0x90] ss:$12 sps:$4 sm:$0xff]  }
  0xa5   : > { %631 = vmatprep.subr.bf16.mxu0 %v1955_v5  ;;  %v2604_v18 = vld [vmem:[%s2577_s28] sm:$0xff]   ;;  %v1980_v23 = vld [vmem:[#allocation8 + $0x78] ss:$12 sps:$4 sm:$0xff]   ;;  %vm2326_vm0 = vmmov 0   ;;  %vm999_vm1 = vcmask 64512   ;;  %vm1111_vm2 = vcmask 130048  }
  0xa6   : > { %v1979_v20 = vld [vmem:[#allocation8 + $0x94] ss:$12 sps:$4 sm:$0xff]   ;;  %v1982_v22 = vld [vmem:[#allocation8 + $0x7c] ss:$12 sps:$4 sm:$0xff]   ;;  %v1985_v24 = vld [vmem:[#allocation8 + $0x64] ss:$12 sps:$4 sm:$0xff]   ;;  %1755 = vmatprep.mubr.msk.bf16.mxu1 %vm2326_vm0, %v2325_v35 }
  0xa7   : > { %v1983_v25 = vld [vmem:[#allocation8 + $0x60] ss:$12 sps:$4 sm:$0xff]   ;;  %v1986_v27 = vld [vmem:[#allocation8 + $0x48] ss:$12 sps:$4 sm:$0xff]   ;;  %v1989_v29 = vld [vmem:[#allocation8 + $0x30] ss:$12 sps:$4 sm:$0xff]  }
  0xa8   : > { %632 = vmatpush1.bf16.msra.mxu0 %v1957_v6  ;;  %v1988_v26 = vld [vmem:[#allocation8 + $0x4c] ss:$12 sps:$4 sm:$0xff]   ;;  %v1991_v28 = vld [vmem:[#allocation8 + $0x34] ss:$12 sps:$4 sm:$0xff]   ;;  %v1994_v30 = vld [vmem:[#allocation8 + $0x1c] ss:$12 sps:$4 sm:$0xff]  }
  0xa9   : > { %633 = vmatprep.subr.bf16.mxu0 %v1958_v7  ;;  %v1992_v31 = vld [vmem:[#allocation8 + $0x18] ss:$12 sps:$4 sm:$0xff]   ;;  %v1995_v33 = vld [vmem:[#allocation8] ss:$12 sps:$4 sm:$0xff]   ;;  %v1998_v48 = vld [vmem:[#allocation7 + $0xb0] ss:$12 sps:$4 sm:$0xff]  }
  0xaa   : > { %v1997_v32 = vld [vmem:[#allocation8 + $0x4] ss:$12 sps:$4 sm:$0xff]   ;;  %v2608_v34 = vld [vmem:[%s2585_s20] sm:$0xf]  ;;  %1740 = vmatpush3.bf16.msra.mxu1 %v1998_v48  ;;  %v2000_v50 = vld [vmem:[#allocation7 + $0x80] ss:$12 sps:$4 sm:$0xff]  }
  0xab   : > { %v1999_v49 = vld [vmem:[#allocation7 + $0x98] ss:$12 sps:$4 sm:$0xff]   ;;  %1741 = vmatprep.subr.bf16.mxu1 %v2325_v35  ;;  %v2001_v51 = vld [vmem:[#allocation7 + $0x68] ss:$12 sps:$4 sm:$0xff]   ;;  %v2002_v52 = vld [vmem:[#allocation7 + $0x50] ss:$12 sps:$4 sm:$0xff]  }
  0xac   : > { %634 = vmatpush1.bf16.msra.mxu0 %v1960_v8  ;;  %v2003_v53 = vld [vmem:[#allocation7 + $0x38] ss:$12 sps:$4 sm:$0xff]   ;;  %v2004_v54 = vld [vmem:[#allocation7 + $0x20] ss:$12 sps:$4 sm:$0xff]   ;;  %v2005_v55 = vld [vmem:[#allocation7 + $0x8] ss:$12 sps:$4 sm:$0xff]  }
  0xad   : > { %635 = vmatprep.subr.bf16.mxu0 %v1961_v9  ;;  %v2006_v56 = vld [vmem:[#allocation8 + $0xb0] ss:$12 sps:$4 sm:$0xff]   ;;  %v2007_v57 = vld [vmem:[#allocation8 + $0x98] ss:$12 sps:$4 sm:$0xff]   ;;  %v2008_v58 = vld [vmem:[#allocation8 + $0x80] ss:$12 sps:$4 sm:$0xff]  }
  0xae   : > { %1742 = vmatpush3.bf16.msra.mxu1 %v1999_v49  ;;  %v2009_v59 = vld [vmem:[#allocation8 + $0x68] ss:$12 sps:$4 sm:$0xff]   ;;  %v2010_v60 = vld [vmem:[#allocation8 + $0x50] ss:$12 sps:$4 sm:$0xff]   ;;  %v2011_v61 = vld [vmem:[#allocation8 + $0x38] ss:$12 sps:$4 sm:$0xff]  }
  0xaf   : > { %1743 = vmatprep.subr.bf16.mxu1 %v2325_v35  ;;  %v2012_v62 = vld [vmem:[#allocation8 + $0x20] ss:$12 sps:$4 sm:$0xff]   ;;  %v2013_v63 = vld [vmem:[#allocation8 + $0x8] ss:$12 sps:$4 sm:$0xff]   ;;  %vm1026_vm3 = vcmask 1043456   ;;  %s1615_s15 = sshll.u32 %s2571_s11, 4 }
  0xb0   : > { %636 = vmatpush1.bf16.msra.mxu0 %v1963_v10  ;;  %s449_s23 = scalar_lea.vmem [#allocation13], %s1615_s15  ;;  %s1694_s4 = sshll.u32 %s2402_s13, 8 }
  0xb1   : > { %637 = vmatprep.subr.bf16.mxu0 %v1964_v11  ;;  %s1417_s14 = sshll.u32 %s449_s23, 4  ;;  %s1690_s6 = sshll.u32 %s2402_s13, 7  ;;  %s2687_s14 = int_to_ptr.vmem [resolvable:$true] %s1417_s14 }
  0xb2   : > { %1744 = vmatpush3.bf16.msra.mxu1 %v2000_v50  ;;  %s456_s24 = scalar_lea.vmem [#allocation14], %s1609_s2  ;;  %s2698_s0 = scalar_lea.hbm %s2776_s8, %s1694_s4 }
  0xb3   : > { %1745 = vmatprep.subr.bf16.mxu1 %v2325_v35  ;;  %s1433_s21 = sshll.u32 %s456_s24, 4  ;;  %s2703_s22 = scalar_lea.hbm %s2777_s9, %s1690_s6  ;;  %s2705_s21 = int_to_ptr.vmem [resolvable:$true] %s1433_s21 }
  0xb4   : > { %638 = vmatpush1.bf16.msra.mxu0 %v1966_v12  ;;  %s1399_s2 = scalar_lea.sflag [#allocation4], %s2571_s11  ;;  %s2202_s20 = scalar_lea.vmem %s2687_s14, 256 }
  0xb5   : > { %639 = vmatprep.subr.bf16.mxu0 %v1967_v13  ;;  %p2203_p4 = scmp.ne.s32.totalorder %s2687_s14, %s2202_s20  ;;  %p2816_p13 = scmp.ne.s32.totalorder %s2800_s19, 0 }
  0xb6   : > { %1746 = vmatpush3.bf16.msra.mxu1 %v2001_v51  ;;  %s2327_s15 = smov [#allocation13]  }
  0xb7   : > { %1747 = vmatprep.subr.bf16.mxu1 %v2325_v35  ;;  %p2204_p0 = pnand %p2203_p4, %p2816_p13  ;;  %s2206_s25 = sshll.u32 %s2327_s15, 4  ;;  %s2207_s25 = int_to_ptr.vmem [resolvable:$false] %s2206_s25 }
  0xb8   : > { %640 = vmatpush1.bf16.msra.mxu0 %v1969_v14  ;;  %s2208_s3 = scalar_lea.vmem %s2207_s25, 512  ;;  %p2209_p2 = scmp.lt.s32.totalorder %s2687_s14, %s2207_s25 }
  0xb9   : > { %641 = vmatprep.subr.bf16.mxu0 %v1970_v15  ;;  %p2205_p7 = pneg %p2204_p0  ;;  %p2210_p5 = scmp.lt.s32.totalorder %s2208_s3, %s2202_s20 }
  0xba   : > { %1748 = vmatpush3.bf16.msra.mxu1 %v2002_v52 }
  0xbb   : > { %1749 = vmatprep.subr.bf16.mxu1 %v2325_v35  ;;  %p2211_p11 = por %p2210_p5, %p2209_p2 }
  0xbc   : > { %642 = vmatpush1.bf16.msra.mxu0 %v1972_v16 }
  0xbd   : > { %871 = vmatprep.subr.bf16.mxu0 %v1976_v17  ;;  %p2212_p8 = pnand %p2211_p11, %p2205_p7 }
  0xbe   : > { %1750 = vmatpush3.bf16.msra.mxu1 %v2003_v53 }
  0xbf   : > { %660 = vmatmul.mubr.bf16.vlgmr.msra.gmra.mxu0 %v2604_v18  ;;  %1751 = vmatprep.subr.bf16.mxu1 %v2325_v35 }
  0xc0   : > { %872 = vmatpush1.bf16.msra.mxu0 %v1974_v19  ;;  %903 = vmatprep.mubr.bf16.mxu0 %v2324_v0 }
  0xc1   : > { %873 = vmatprep.subr.bf16.mxu0 %v1979_v20 }
  0xc2   : > { %1752 = vmatpush3.bf16.msra.mxu1 %v2004_v54  ;;  %v2016_v54 = vld [vmem:[#allocation11 + $0x38] sm:$0xff]  }
  0xc3   : > { %1753 = vmatprep.subr.bf16.mxu1 %v2325_v35 }
  0xc4   : > { %874 = vmatpush1.bf16.msra.mxu0 %v1977_v21 }
  0xc5   : > { %875 = vmatprep.subr.bf16.mxu0 %v1982_v22 }
  0xc6   : > { %1754 = vmatpush3.bf16.msra.mxu1 %v2005_v55 }
  0xc7   : > { %1759 = vmatprep.subr.bf16.mxu1 %v2325_v35 }
  0xc8   : > { %876 = vmatpush1.bf16.msra.mxu0 %v1980_v23 }
  0xc9   : > { %877 = vmatprep.subr.bf16.mxu0 %v1985_v24  ;;  %1756 = vmatmul.mubr.bf16.vlgmr.msra.gmra.mxu1 %v2604_v18 }
  0xca   : > { %1760 = vmatpush3.bf16.msra.mxu1 %v2006_v56  ;;  %1775 = vmatprep.mubr.msk.bf16.mxu1 %vm2326_vm0, %v2325_v35  ;;  %v2018_v56 = vld [vmem:[#allocation11 + $0x30] sm:$0xff]  }
  0xcb   : > { %1761 = vmatprep.subr.bf16.mxu1 %v2325_v35 }
  0xcc   : > { %878 = vmatpush1.bf16.msra.mxu0 %v1983_v25 }
  0xcd   : > { %879 = vmatprep.subr.bf16.mxu0 %v1988_v26 }
  0xce   : > { %1762 = vmatpush3.bf16.msra.mxu1 %v2007_v57  ;;  %v2020_v57 = vld [vmem:[#allocation11 + $0x28] sm:$0xff]  }
  0xcf   : > { %1763 = vmatprep.subr.bf16.mxu1 %v2325_v35 }
  0xd0   : > { %880 = vmatpush1.bf16.msra.mxu0 %v1986_v27 }
  0xd1   : > { %881 = vmatprep.subr.bf16.mxu0 %v1991_v28 }
  0xd2   : > { %1764 = vmatpush3.bf16.msra.mxu1 %v2008_v58  ;;  %v2022_v58 = vld [vmem:[#allocation11 + $0x20] sm:$0xff]  }
  0xd3   : > { %1765 = vmatprep.subr.bf16.mxu1 %v2325_v35 }
  0xd4   : > { %882 = vmatpush1.bf16.msra.mxu0 %v1989_v29 }
  0xd5   : > { %883 = vmatprep.subr.bf16.mxu0 %v1994_v30 }
  0xd6   : > { %1766 = vmatpush3.bf16.msra.mxu1 %v2009_v59  ;;  %v2024_v59 = vld [vmem:[#allocation11 + $0x18] sm:$0xff]  }
  0xd7   : > { %1767 = vmatprep.subr.bf16.mxu1 %v2325_v35 }
  0xd8   : > { %884 = vmatpush1.bf16.msra.mxu0 %v1992_v31 }
  0xd9   : > { %885 = vmatprep.subr.bf16.mxu0 %v1997_v32 }
  0xda   : > { %1768 = vmatpush3.bf16.msra.mxu1 %v2010_v60  ;;  %v2025_v60 = vld [vmem:[#allocation10 + $0x8] sm:$0xff]  }
  0xdb   : > { %1769 = vmatprep.subr.bf16.mxu1 %v2325_v35 }
  0xdc   : > { %886 = vmatpush1.bf16.msra.mxu0 %v1995_v33 }
  0xdd   : > { %1779 = vmatprep.subr.bf16.mxu0 %v2325_v35 }
  0xde   : > { %1770 = vmatpush3.bf16.msra.mxu1 %v2011_v61  ;;  %v2026_v61 = vld [vmem:[#allocation11 + $0x10] sm:$0xff]  }
  0xdf   : > { %904 = vmatmul.mubr.bf16.vlgmr.msra.gmra.mxu0 %v2608_v34  ;;  %1771 = vmatprep.subr.bf16.mxu1 %v2325_v35 }
  0xe0   : > { %1781 = vmatprep.mubr.msk.bf16.mxu0 %vm2326_vm0, %v2325_v35 }
  0xe2   : > { %1772 = vmatpush3.bf16.msra.mxu1 %v2012_v62  ;;  %v2027_v62 = vld [vmem:[#allocation10] sm:$0xff]  }
  0xe3   : > { %1773 = vmatprep.subr.bf16.mxu1 %v2325_v35 }
  0xe6   : > { %1774 = vmatpush3.bf16.msra.mxu1 %v2013_v63  ;;  %v2028_v63 = vld [vmem:[#allocation11 + $0x8] sm:$0xff]  }
  0xe7   : > { %1785 = vmatprep.subr.bf16.mxu1 %v2325_v35 }
  0xe9   : > { %1776 = vmatmul.mubr.bf16.vlgmr.msra.gmra.mxu1 %v2608_v34 }
  0xea   : > { %1787 = vmatprep.mubr.msk.bf16.mxu1 %vm2326_vm0, %v2325_v35 }
 0x17f   : > { %v661_v36 = vpop.f32.mrf.mxu0 }
 0x181   : > { %v663_v37 = vpop.f32.mrf.mxu0 }
 0x183   : > { %v665_v38 = vpop.f32.mrf.mxu0 }
 0x184   : > { %v952_v45 = vpack.c.bf16 %v665_v38, %v661_v36  ;;  %v2014_v38 = vld [vmem:[#allocation10 + $0x38] sm:$0xff]  }
 0x185   : > { %v667_v39 = vpop.f32.mrf.mxu0 }
 0x186   : > { %v953_v46 = vpack.c.bf16 %v667_v39, %v663_v37  ;;  %v2015_v39 = vld [vmem:[#allocation10 + $0x30] sm:$0xff]  }
 0x189   : > { %v2648_v11 = vpop.f32.mrf.mxu1 }
 0x18b   : > { %v1757_v12 = vpop.f32.mrf.mxu1 }
 0x18d   : > { %v2650_v13 = vpop.f32.mrf.mxu1 }
 0x18e   : > { %v954_v14 = vpack.c.bf16 %v2650_v13, %v2648_v11 }
 0x18f   : > { %v1758_v15 = vpop.f32.mrf.mxu1 }
 0x19f   : > { %v905_v40 = vpop.f32.mrf.mxu0 }
 0x1a0   : > { %v955_v47 = vpack.c.bf16 %v905_v40, %v905_v40  ;;  %v2017_v40 = vld [vmem:[#allocation10 + $0x28] sm:$0xff]  }
 0x1a1   : > { %v907_v41 = vpop.f32.mrf.mxu0 }
 0x1a2   : > { %v956_v42 = vpack.c.bf16 %v907_v41, %v907_v41  ;;  %v2019_v41 = vld [vmem:[#allocation10 + $0x20] sm:$0xff]  }
 0x1a3   : > { %v909_v43 = vpop.f32.mrf.mxu0 }
 0x1a4   : > { %1780 = vmatpush3.bf16.xpose.msra.mxu0 %v956_v42  ;;  %v2021_v42 = vld [vmem:[#allocation10 + $0x18] sm:$0xff]   ;;  %v2023_v43 = vld [vmem:[#allocation10 + $0x10] sm:$0xff]  }
 0x1a5   : > { %v910_v44 = vpop.f32.mrf.mxu0  ;;  %1791 = vmatprep.subr.bf16.mxu0 %v2325_v35 }
 0x1a9   : > { %v946_v31 = vpop.f32.mrf.mxu1 }
 0x1aa   : > { %v957_v34 = vpack.c.bf16 %v946_v31, %v946_v31 }
 0x1ab   : > { %1782 = vmatmul.mubr.bf16.vlgmr.msra.gmra.mxu0 %v952_v45  ;;  %v1777_v32 = vpop.f32.mrf.mxu1 }
 0x1ac   : > { %1792 = vmatpush3.bf16.xpose.msra.mxu0 %v953_v46  ;;  %1793 = vmatprep.mubr.msk.bf16.mxu0 %vm2326_vm0, %v2325_v35  ;;  %v1028_v37 = vsel %vm1026_vm3, %v957_v34, 0 }
 0x1ad   : > { %1803 = vmatprep.subr.bf16.mxu0 %v2325_v35  ;;  %v949_v33 = vpop.f32.mrf.mxu1  ;;  %1786 = vmatpush3.bf16.msra.mxu1 %v1028_v37 }
 0x1ae   : > { %1797 = vmatprep.subr.bf16.mxu1 %v2325_v35 }
 0x1af   : > { %v1778_v36 = vpop.f32.mrf.mxu1 }
 0x1b3   : > { %1794 = vmatmul.mubr.bf16.vlgmr.msra.gmra.mxu0 %v955_v47 }
 0x1b4   : > { %1819 = vmatprep.mubr.msk.bf16.mxu0 %vm2326_vm0, %v2325_v35  ;;  %1804 = vmatpush3.bf16.msra.mxu0 %v2014_v38 }
 0x1b5   : > { %1805 = vmatprep.subr.bf16.mxu0 %v2325_v35 }
 0x1b8   : > { %1806 = vmatpush3.bf16.msra.mxu0 %v2015_v39 }
 0x1b9   : > { %1807 = vmatprep.subr.bf16.mxu0 %v2325_v35 }
 0x1bc   : > { %1808 = vmatpush3.bf16.msra.mxu0 %v2017_v40 }
 0x1bd   : > { %1809 = vmatprep.subr.bf16.mxu0 %v2325_v35 }
 0x1c0   : > { %1810 = vmatpush3.bf16.msra.mxu0 %v2019_v41 }
 0x1c1   : > { %1811 = vmatprep.subr.bf16.mxu0 %v2325_v35 }
 0x1c4   : > { %1812 = vmatpush3.bf16.msra.mxu0 %v2021_v42 }
 0x1c5   : > { %1813 = vmatprep.subr.bf16.mxu0 %v2325_v35 }
 0x1c8   : > { %1814 = vmatpush3.bf16.msra.mxu0 %v2023_v43 }
 0x1c9   : > { %1815 = vmatprep.subr.bf16.mxu0 %v2325_v35 }
 0x1cc   : > { %1816 = vmatpush3.bf16.msra.mxu0 %v2025_v60 }
 0x1cd   : > { %1817 = vmatprep.subr.bf16.mxu0 %v2325_v35 }
 0x1d0   : > { %1818 = vmatpush3.bf16.msra.mxu0 %v2027_v62 }
 0x26b   : > { %v992_v0 = vpop.f32.mrf.mxu0 }
 0x26c   : > { %v1000_v1 = vsel %vm999_vm1, %v992_v0, -inf }
 0x26d   : > { %1001 = vmax.xlane.f32.xlu0 %v1000_v1  ;;  %v1783_v2 = vpop.f32.mrf.mxu0 }
 0x26f   : > { %v995_v3 = vpop.f32.mrf.mxu0 }
 0x270   : > { %v1003_v4 = vsel %vm999_vm1, %v995_v3, -inf }
 0x271   : > { %1004 = vmax.xlane.f32.xlu0 %v1003_v4  ;;  %v1784_v5 = vpop.f32.mrf.mxu0 }
 0x273   : > { %v1105_v6 = vpop.f32.mrf.mxu0 }
 0x274   : > { %v1112_v7 = vsel %vm1111_vm2, %v1105_v6, -inf }
 0x275   : > { %1113 = vmax.xlane.f32.xlu1 %v1112_v7  ;;  %v1795_v8 = vpop.f32.mrf.mxu0 }
 0x277   : > { %v1108_v9 = vpop.f32.mrf.mxu0 }
 0x279   : > { %v1796_v10 = vpop.f32.mrf.mxu0 }
 0x2f6   : > { %v1002_v16 = vpop.xlane.xlu0 %1001 }
 0x2f7   : > { %v1006_v17 = vsub.f32 %v992_v0, %v1002_v16  ;;  %v2029_v0 = vld [vmem:[#allocation11] sm:$0xff]  }
 0x2f9   : > { %v1008_v18 = vmul.f32 1.442695, %v1006_v17 }
 0x2fa   : > { %v1005_v19 = vpop.xlane.xlu0 %1004 }
 0x2fb   : > { %2030 = vpow2.f32 %v1008_v18  ;;  %v1007_v20 = vsub.f32 %v995_v3, %v1005_v19 }
 0x2fd   : > { %v1010_v21 = vmul.f32 1.442695, %v1007_v20 }
 0x2fe   : > { %v1114_v22 = vpop.xlane.xlu1 %1113 }
 0x2ff   : > { %2032 = vpow2.f32 %v1010_v21  ;;  %v1115_v23 = vsub.f32 %v1105_v6, %v1114_v22 }
 0x301   : > { %v1116_v24 = vmul.f32 1.442695, %v1115_v23 }
 0x303   : > { %2034 = vpow2.f32 %v1116_v24 }
 0x308   : > { %v2031_v25 = vpop.eup %2030 }
 0x309   : > { %v1012_v26 = vsel %vm999_vm1, %v2031_v25, 0.0 }
 0x30a   : > { %1013 = vadd.xlane.f32.xlu1 %v1012_v26 }
 0x30c   : > { %v2033_v27 = vpop.eup %2032 }
 0x30d   : > { %v1015_v28 = vsel %vm999_vm1, %v2033_v27, 0.0 }
 0x30e   : > { %1016 = vadd.xlane.f32.xlu0 %v1015_v28 }
 0x310   : > { %v2035_v29 = vpop.eup %2034 }
 0x311   : > { %v1118_v30 = vsel %vm1111_vm2, %v2035_v29, 0.0 }
 0x312   : > { %1119 = vadd.xlane.f32.xlu1 %v1118_v30 }
 0x393   : > { %v1014_v44 = vpop.xlane.xlu1 %1013 }
 0x394   : > { %2036 = vrcp.f32 %v1014_v44 }
 0x397   : > { %v1017_v45 = vpop.xlane.xlu0 %1016 }
 0x398   : > { %2038 = vrcp.f32 %v1017_v45 }
 0x39b   : > { %v1120_v46 = vpop.xlane.xlu1 %1119 }
 0x39c   : > { %2040 = vrcp.f32 %v1120_v46 }
 0x3a1   : > { %v2037_v47 = vpop.eup %2036 }
 0x3a2   : > { %v1020_v50 = vmul.f32 %v2037_v47, %v2031_v25 }
 0x3a5   : > { %v2039_v48 = vpop.eup %2038 }
 0x3a6   : > { %v1021_v49 = vmul.f32 %v2039_v48, %v2033_v27 }
 0x3a8   : > { %v1022_v51 = vpack.c.bf16 %v1021_v49, %v1020_v50 }
 0x3a9   : > { %v2041_v52 = vpop.eup %2040 }
 0x3aa   : > { %1788 = vmatmul.mubr.msk.bf16.vlgmr.msra.gmra.mxu1 %vm999_vm1, %v1022_v51  ;;  %v1122_v53 = vmul.f32 %v2041_v52, %v2035_v29 }
 0x3ab   : > { %1798 = vmatpush3.bf16.msra.mxu1 %v954_v14  ;;  %1799 = vmatprep.mubr.msk.bf16.mxu1 %vm2326_vm0, %v2325_v35  ;;  %v1685_v14 = vld [vmem:[%s2775_s7] ss:$0 sm:$0xff] }
 0x3ac   : > { %1823 = vmatprep.subr.bf16.mxu1 %v2325_v35  ;;  %v1123_v55 = vpack.c.bf16 %v1122_v53, %v1122_v53 }
 0x3b2   : > { %1800 = vmatmul.mubr.msk.bf16.vlgmr.msra.gmra.mxu1 %vm1111_vm2, %v1123_v55 }
 0x3b3   : > { %1824 = vmatpush3.bf16.msra.mxu1 %v2016_v54  ;;  %1839 = vmatprep.mubr.msk.bf16.mxu1 %vm2326_vm0, %v2325_v35 }
 0x3b4   : > { %1825 = vmatprep.subr.bf16.mxu1 %v2325_v35 }
 0x3b7   : > { %1826 = vmatpush3.bf16.msra.mxu1 %v2018_v56 }
 0x3b8   : > { %1827 = vmatprep.subr.bf16.mxu1 %v2325_v35 }
 0x3bb   : > { %1828 = vmatpush3.bf16.msra.mxu1 %v2020_v57 }
 0x3bc   : > { %1829 = vmatprep.subr.bf16.mxu1 %v2325_v35 }
 0x3bf   : > { %1830 = vmatpush3.bf16.msra.mxu1 %v2022_v58 }
 0x3c0   : > { %1831 = vmatprep.subr.bf16.mxu1 %v2325_v35 }
 0x3c3   : > { %1832 = vmatpush3.bf16.msra.mxu1 %v2024_v59 }
 0x3c4   : > { %1833 = vmatprep.subr.bf16.mxu1 %v2325_v35 }
 0x3c7   : > { %1834 = vmatpush3.bf16.msra.mxu1 %v2026_v61 }
 0x3c8   : > { %1835 = vmatprep.subr.bf16.mxu1 %v2325_v35 }
 0x3cb   : > { %1836 = vmatpush3.bf16.msra.mxu1 %v2028_v63 }
 0x3cc   : > { %1837 = vmatprep.subr.bf16.mxu1 %v2325_v35  ;;  %v1676_v35 = vld [vmem:[%s2773_s5] ss:$0 sm:$0xff] }
 0x3cf   : > { %1838 = vmatpush3.bf16.msra.mxu1 %v2029_v0 }
 0x46a   : > { %v1064_v1 = vpop.f32.mrf.mxu1 }
 0x46c   : > { %v1789_v2 = vpop.f32.mrf.mxu1 }
 0x46e   : > { %v1067_v3 = vpop.f32.mrf.mxu1 }
 0x46f   : > { %v1167_v4 = vpack.c.bf16 %v1067_v3, %v1064_v1 }
 0x470   : > { %v1790_v5 = vpop.f32.mrf.mxu1 }
 0x471   : > { %1820 = vmatmul.mubr.bf16.vlgmr.msra.gmra.mxu0 %v1167_v4 }
 0x472   : > { %v1161_v6 = vpop.f32.mrf.mxu1 }
 0x473   : > { %v1282_v7 = vpack.c.bf16 %v1161_v6, %v1161_v6 }
 0x474   : > { %v1801_v8 = vpop.f32.mrf.mxu1 }
 0x475   : > { %1840 = vmatmul.mubr.bf16.vlgmr.msra.gmra.mxu1 %v1282_v7 }
 0x476   : > { %v1164_v9 = vpop.f32.mrf.mxu1 }
 0x478   : > { %v1802_v10 = vpop.f32.mrf.mxu1 }
 0x531   : > { %v1266_v11 = vpop.f32.mrf.mxu0 }
 0x532   : > { %v1280_v12 = vadd.f32 %v1676_v35, %v1266_v11 }
 0x533   : > { %v1821_v13 = vpop.f32.mrf.mxu0 }
 0x534   : > { %1395 = vst [vmem:[%s449_s23] sm:$0xff] %v1280_v12 }
 0x535   : > { %v1269_v15 = vpop.f32.mrf.mxu0  ;;  %v1381_v16 = vpop.f32.mrf.mxu1 }
 0x536   : > { %v1281_v17 = vadd.f32 %v1676_v35, %v1269_v15  ;;  %v1394_v18 = vadd.f32 %v1685_v14, %v1381_v16 }
 0x537   : > { %v1822_v19 = vpop.f32.mrf.mxu0  ;;  %v1841_v20 = vpop.f32.mrf.mxu1 }
 0x538   : > { %1396 = vst [vmem:[%s449_s23 + $0x8] sm:$0xff] %v1281_v17  ;;  %1397 = vst [vmem:[%s456_s24] sm:$0xff] %v1394_v18 }
 0x539   : > { %v1384_v21 = vpop.f32.mrf.mxu1 }
 0x53a   : > { %2215 = shalt.err (!%p2212_p8)
}
 0x53b   : > { %s2216_s23 = scalar_lea.hbm %s2698_s0, 256  ;;  %s2220_s29 = scalar_lea.hbm %s2776_s8, 1024 }
 0x53c   : > { %p2217_p10 = scmp.ne.s32.totalorder %s2698_s0, %s2216_s23  ;;  %p2221_p9 = scmp.lt.s32.totalorder %s2698_s0, %s2776_s8 }
 0x53d   : > { %p2222_p12 = scmp.lt.s32.totalorder %s2220_s29, %s2216_s23 }
 0x53e   : > { %p2218_p3 = pnand %p2217_p10, %p2816_p13 }
 0x53f   : > { %p2223_p6 = por %p2222_p12, %p2221_p9 }
 0x540   : > { %p2219_p1 = pneg %p2218_p3 }
 0x542   : > { %p2224_p4 = pnand %p2223_p6, %p2219_p1 }
 0x544   : > { %2227 = shalt.err (!%p2224_p4)
}
 0x545   : > { %s2328_s27 = smov 128   ;;  %s2329_s28 = smov 8  }
 0x546   : > { %1863 = dma.vmem_to_hbm [thread:$0]  (%p2816_p13), %s2687_s14, 256, %s2698_s0, %s1399_s2, %s2328_s27, %s2328_s27, %s2329_s28  }
 0x547   : > { %s1404_s13 = scalar_lea.sflag [#allocation15], %s2571_s11  ;;  %s2228_s17 = scalar_lea.vmem %s2705_s21, 128 }
 0x548   : > { %p2229_p0 = scmp.ne.s32.totalorder %s2705_s21, %s2228_s17  ;;  %s2330_s20 = smov [#allocation14]  }
 0x549   : > { %s2232_s15 = sshll.u32 %s2330_s20, 4  ;;  %s2233_s15 = int_to_ptr.vmem [resolvable:$false] %s2232_s15 }
 0x54a   : > { %p2230_p7 = pnand %p2229_p0, %p2816_p13  ;;  %s2234_s25 = scalar_lea.vmem %s2233_s15, 256 }
 0x54b   : > { %p2235_p5 = scmp.lt.s32.totalorder %s2705_s21, %s2233_s15  ;;  %p2236_p11 = scmp.lt.s32.totalorder %s2234_s25, %s2228_s17 }
 0x54c   : > { %p2231_p2 = pneg %p2230_p7 }
 0x54d   : > { %p2237_p8 = por %p2236_p11, %p2235_p5 }
 0x54f   : > { %p2238_p10 = pnand %p2237_p8, %p2231_p2 }
 0x551   : > { %2241 = shalt.err (!%p2238_p10)
}
 0x552   : > { %s2242_s14 = scalar_lea.hbm %s2703_s22, 128  ;;  %s2246_s2 = scalar_lea.hbm %s2777_s9, 512 }
 0x553   : > { %p2243_p3 = scmp.ne.s32.totalorder %s2703_s22, %s2242_s14  ;;  %p2247_p12 = scmp.lt.s32.totalorder %s2703_s22, %s2777_s9 }
 0x554   : > { %p2248_p6 = scmp.lt.s32.totalorder %s2246_s2, %s2242_s14 }
 0x555   : > { %p2244_p1 = pnand %p2243_p3, %p2816_p13 }
 0x556   : > { %p2249_p4 = por %p2248_p6, %p2247_p12 }
 0x557   : > { %p2245_p9 = pneg %p2244_p1 }
 0x559   : > { %p2250_p0 = pnand %p2249_p4, %p2245_p9 }
 0x55b   : > { %2253 = shalt.err (!%p2250_p0)
}
 0x55c   : > { %1864 = dma.vmem_to_hbm [thread:$0]  (%p2816_p13), %s2705_s21, 128, %s2703_s22, %s1404_s13   ;;  %v1842_v22 = vpop.f32.mrf.mxu1 }
 0x55d PF: > { %p1903_p7 = scmp.ge.s32.totalorder %s2312_s12, 2  ;;  %s1445_s4 = sand.u32 1, %s2300_s30  }
 0x55e   : > { %p2817_p2 = scmp.ne.s32.totalorder %s2792_s16, 0  ;;  %s1446_s26 = scalar_lea.sflag [#allocation4], %s1445_s4 }
 0x560   : > { %p1888_p5 = pnand %p1903_p7, %p2817_p2 }
 0x562   : > { %p1889_p11 = pneg %p1888_p5 }
 0x564   : > { %2291 = dma.done.wait (%p1889_p11), %s1446_s26, 256  }
 0x565   : > { %2293 = vsyncadd (%p1889_p11), %s1446_s26, 4294967040  ;;  %s1455_s29 = scalar_lea.sflag [#allocation15], %s1445_s4 }
 0x566   : > { %2295 = dma.done.wait (%p1889_p11), %s1455_s29, 128  }
 0x567   : > { %2297 = vsyncadd (%p1889_p11), %s1455_s29, 4294967168  ;;  %s2818_s19 = sld [smem:[#allocation23_spill]]  ;;  %p31_p13 = scmp.ge.s32.totalorder %s2474_s18, 6  }
 0x568   : > { %s2819_s11 = sld [smem:[#allocation24_spill]]  ;;  %s2820_s30 = smov %s2304_s10 }
 0x569   : > { %s2822_s12 = smov %s2474_s18  ;;  %33 = sbr.rel (!%p31_p13) target bundleno = 17 (0x11), region = 143 }
 0x56d   : > { %s2821_s10 = smov %s2818_s19 }
 0x56e   :  { %1460 = vsyncpa [#allocation3], 1 }
 0x56f   :  { %1462 = vsyncpa [#allocation3 + $0x1], 1 }
 0x570   :  { %1463 = vsyncpa [#allocation6], 1 }
 0x571   :  { %1465 = vsyncpa [#allocation6 + $0x1], 1 }
 0x572   :  { %1466 = vsyncpa [#allocation9], 1 }
 0x573   :  { %1467 = vsyncpa [#allocation12], 1 }
 0x574   :  { %1468 = vsyncpa [#allocation4], 1 }
 0x575   :  { %1470 = vsyncpa [#allocation4 + $0x1], 1 }
 0x576   :  { %1471 = vsyncpa [#allocation15], 1 }
 0x577   :  { %1473 = vsyncpa [#allocation15 + $0x1], 1 }

</bundles_post_ra>
